<compile_context>
chip_gen: v7x
topology: tpu7x:2x2x1
jax: 0.10.0
libtpu: 0.0.40
codegen_flags: <defaults>
</compile_context>

<pallas_src>
import jax
import jax.numpy as jnp
from jax.experimental import pallas as pl
from jax.experimental.pallas import tpu as pltpu

HIDDEN = 256
_TB_MAX = 1024                      # good for v5e/v6e/v7x per review
_VMEM_LIMIT = 48 * 1024 * 1024      # safe on all gens (v7x physical = 64 MiB)


def _critic_kernel(sa_ref, w14_ref, b14_ref,
                   w2_ref, b2_ref, w5_ref, b5_ref,
                   w3p_ref, w6p_ref, b36_ref,
                   out_ref):
    H = w2_ref.shape[0]

    sa = sa_ref[...]  # bf16 [TB, S+A]

    # ---- fused layer 1 for both heads: one matmul -> [TB, 2H] f32 ----
    h14 = jnp.dot(sa, w14_ref[...], preferred_element_type=jnp.float32) + b14_ref[...]
    h14 = jnp.maximum(h14, 0.0)

    h = h14[:, :H].astype(jnp.bfloat16)   # Q1 branch
    g = h14[:, H:].astype(jnp.bfloat16)   # Q2 branch

    # ---- layer 2 (separate per head: different inputs) ----
    h2 = jnp.maximum(
        jnp.dot(h, w2_ref[...], preferred_element_type=jnp.float32) + b2_ref[...],
        0.0)
    g2 = jnp.maximum(
        jnp.dot(g, w5_ref[...], preferred_element_type=jnp.float32) + b5_ref[...],
        0.0)

    # ---- layer 3: two accumulating K=256, N=2 matmuls (no concat temp) ----
    q = (jnp.dot(h2.astype(jnp.bfloat16), w3p_ref[...],
                 preferred_element_type=jnp.float32)
         + jnp.dot(g2.astype(jnp.bfloat16), w6p_ref[...],
                   preferred_element_type=jnp.float32)
         + b36_ref[...])
    out_ref[...] = q.astype(out_ref.dtype)


def _full_block(arr):
    """Whole-array block, resident across the batch grid (constant index_map)."""
    shape = arr.shape
    # default-arg capture avoids the late-binding-lambda bug
    return pl.BlockSpec(shape, lambda i, _n=len(shape): (0,) * _n)


def _round_up(x, m):
    return -(-x // m) * m


def _pick_tb(B):
    """Batch tile: big enough to amortize the ~0.35us/step pipeline overhead,
    but keeping >= 2 grid steps for large B so both v7x TensorCores get work."""
    if B <= 256:
        return B                            # single full-batch tile
    half = _round_up(pl.cdiv(B, 2), 8)      # >= 2 tiles, multiple of 8
    return min(_TB_MAX, half)


def critic_forward(state, action, kp):
    """Pallas implementation of CriticNetwork.forward.

    state:  [B, state_dim]  float32
    action: [B, action_dim] float32
    kp:     packed kernel params (see pack_params)
    returns (q1, q2), each [B, 1] float32
    """
    B = state.shape[0]
    # Same concat as torch.cat([state, action], 1); cast to bf16 once here so
    # the kernel streams half the activation bytes and skips per-tile casts.
    sa = jnp.concatenate([state, action], axis=1).astype(jnp.bfloat16)
    in_dim = sa.shape[1]

    TB = _pick_tb(B)
    n_tiles = pl.cdiv(B, TB)

    operands = (sa,
                kp["w14"], kp["b14"],
                kp["w2"], kp["b2"], kp["w5"], kp["b5"],
                kp["w3p"], kp["w6p"], kp["b36"])

    in_specs = [pl.BlockSpec((TB, in_dim), lambda i: (i, 0))] + \
               [_full_block(op) for op in operands[1:]]

    out_spec = pl.BlockSpec((TB, 2), lambda i: (i, 0))

    q = pl.pallas_call(
        _critic_kernel,
        out_shape=jax.ShapeDtypeStruct((B, 2), jnp.float32),
        grid=(n_tiles,),
        in_specs=in_specs,
        out_specs=out_spec,
        compiler_params=pltpu.CompilerParams(
            dimension_semantics=("parallel",),
            vmem_limit_bytes=_VMEM_LIMIT),
    )(*operands)

    return q[:, 0:1], q[:, 1:2]


def init_params(key, state_dim, action_dim, hidden=HIDDEN):
    """PyTorch-style per-layer params. nn.Linear weights are (out, in); we
    store them pre-transposed as (in, out); biases as (1, out)."""
    in_dim = state_dim + action_dim
    keys = jax.random.split(key, 12)

    def lin(kw, kb, fan_in, fan_out):
        bound = 1.0 / jnp.sqrt(fan_in)
        w = jax.random.uniform(kw, (fan_in, fan_out), jnp.float32, -bound, bound)
        b = jax.random.uniform(kb, (1, fan_out), jnp.float32, -bound, bound)
        return w, b

    p = {}
    p["w1"], p["b1"] = lin(keys[0], keys[1], in_dim, hidden)
    p["w2"], p["b2"] = lin(keys[2], keys[3], hidden, hidden)
    p["w3"], p["b3"] = lin(keys[4], keys[5], hidden, 1)
    p["w4"], p["b4"] = lin(keys[6], keys[7], in_dim, hidden)
    p["w5"], p["b5"] = lin(keys[8], keys[9], hidden, hidden)
    p["w6"], p["b6"] = lin(keys[10], keys[11], hidden, 1)
    return p


def pack_params(p, weight_dtype=jnp.bfloat16):
    """Pack per-layer params into the fused / bf16 layout the kernel expects."""
    w14 = jnp.concatenate([p["w1"], p["w4"]], axis=1)                 # (S+A, 2H)
    w3p = jnp.concatenate([p["w3"], jnp.zeros_like(p["w3"])], axis=1)  # (H,2) col0
    w6p = jnp.concatenate([jnp.zeros_like(p["w6"]), p["w6"]], axis=1)  # (H,2) col1
    return {
        "w14": w14.astype(weight_dtype),
        "b14": jnp.concatenate([p["b1"], p["b4"]], axis=1),           # (1, 2H) f32
        "w2": p["w2"].astype(weight_dtype),                           # (H, H)
        "b2": p["b2"],                                                # (1, H) f32
        "w5": p["w5"].astype(weight_dtype),                           # (H, H)
        "b5": p["b5"],                                                # (1, H) f32
        "w3p": w3p.astype(weight_dtype),                              # (H, 2)
        "w6p": w6p.astype(weight_dtype),                              # (H, 2)
        "b36": jnp.concatenate([p["b3"], p["b6"]], axis=1),           # (1, 2) f32
    }


def _ref_forward_bf16(state, action, kp, hidden=HIDDEN):
    """Plain-JAX reference with the exact same (bf16) math as the kernel."""
    sa = jnp.concatenate([state, action], axis=1).astype(jnp.bfloat16)

    def mm(x, w):
        return jnp.dot(x.astype(jnp.bfloat16), w,
                       preferred_element_type=jnp.float32)

    h14 = jnp.maximum(mm(sa, kp["w14"]) + kp["b14"], 0.0)
    h, g = h14[:, :hidden], h14[:, hidden:]
    h2 = jnp.maximum(mm(h, kp["w2"]) + kp["b2"], 0.0)
    g2 = jnp.maximum(mm(g, kp["w5"]) + kp["b5"], 0.0)
    q = mm(h2, kp["w3p"]) + mm(g2, kp["w6p"]) + kp["b36"]
    return q[:, 0:1], q[:, 1:2]


def _ref_forward_f32(state, action, p):
    """Original full-f32 math (matches the PyTorch module's forward)."""
    sa = jnp.concatenate([state, action], axis=1)
    r1 = jnp.maximum(sa @ p["w1"] + p["b1"], 0.0)
    r1 = jnp.maximum(r1 @ p["w2"] + p["b2"], 0.0)
    r1 = r1 @ p["w3"] + p["b3"]
    r2 = jnp.maximum(sa @ p["w4"] + p["b4"], 0.0)
    r2 = jnp.maximum(r2 @ p["w5"] + p["b5"], 0.0)
    r2 = r2 @ p["w6"] + p["b6"]
    return r1, r2


def _check(state, action, params, kparams):
    q1, q2 = jax.jit(critic_forward)(state, action, kparams)
    jax.block_until_ready((q1, q2))
    B = state.shape[0]
    assert q1.shape == (B, 1) and q2.shape == (B, 1)

    # Tight check vs. a plain-JAX model of the exact kernel math (bf16 weights).
    r1b, r2b = _ref_forward_bf16(state, action, kparams)
    assert jnp.allclose(q1, r1b, atol=1e-3, rtol=1e-3)
    assert jnp.allclose(q2, r2b, atol=1e-3, rtol=1e-3)

    # Loose check vs. the original f32 module semantics (bf16 rounding only).
    r1f, r2f = _ref_forward_f32(state, action, params)
    assert jnp.allclose(q1, r1f, atol=5e-2, rtol=5e-2)
    assert jnp.allclose(q2, r2f, atol=5e-2, rtol=5e-2)


if __name__ == "__main__":
    state_dim, action_dim = 16, 4

    key = jax.random.PRNGKey(0)
    k_params, k_s1, k_a1, k_s2, k_a2 = jax.random.split(key, 5)

    params = init_params(k_params, state_dim, action_dim)
    kparams = pack_params(params)

    # Small batch: single full-batch tile path.
    state = jax.random.normal(k_s1, (8, state_dim), jnp.float32)
    action = jax.random.normal(k_a1, (8, action_dim), jnp.float32)
    _check(state, action, params, kparams)

    # Larger batch with B % TB != 0: multi-tile + partial-last-block path.
    state_b = jax.random.normal(k_s2, (300, state_dim), jnp.float32)
    action_b = jax.random.normal(k_a2, (300, action_dim), jnp.float32)
    _check(state_b, action_b, params, kparams)

    print("KERNEL_OK")
</pallas_src>

<mosaic_0001>
module attributes {stable_mosaic.version = 11 : i64} {
  func.func @_critic_kernel(%arg0: i32, %arg1: memref<8x20xbf16, #tpu.memory_space<vmem>>, %arg2: memref<20x512xbf16, #tpu.memory_space<vmem>>, %arg3: memref<1x512xf32, #tpu.memory_space<vmem>>, %arg4: memref<256x256xbf16, #tpu.memory_space<vmem>>, %arg5: memref<1x256xf32, #tpu.memory_space<vmem>>, %arg6: memref<256x256xbf16, #tpu.memory_space<vmem>>, %arg7: memref<1x256xf32, #tpu.memory_space<vmem>>, %arg8: memref<256x2xbf16, #tpu.memory_space<vmem>>, %arg9: memref<256x2xbf16, #tpu.memory_space<vmem>>, %arg10: memref<1x2xf32, #tpu.memory_space<vmem>>, %arg11: memref<8x2xf32, #tpu.memory_space<vmem>>) attributes {dimension_semantics = [#tpu.dimension_semantics<parallel>], iteration_bounds = array<i64: 1>, scalar_prefetch = 0 : i64, scratch_operands = 0 : i64, tpu.core_type = #tpu.core_type<tc>, window_params = [{transform_indices = @transform_0, window_bounds = array<i64: 8, 20>}, {pipeline_mode = #tpu.pipeline_mode<synchronous>, transform_indices = @transform_1, window_bounds = array<i64: 20, 512>}, {pipeline_mode = #tpu.pipeline_mode<synchronous>, transform_indices = @transform_2, window_bounds = array<i64: 1, 512>}, {pipeline_mode = #tpu.pipeline_mode<synchronous>, transform_indices = @transform_3, window_bounds = array<i64: 256, 256>}, {pipeline_mode = #tpu.pipeline_mode<synchronous>, transform_indices = @transform_4, window_bounds = array<i64: 1, 256>}, {pipeline_mode = #tpu.pipeline_mode<synchronous>, transform_indices = @transform_5, window_bounds = array<i64: 256, 256>}, {pipeline_mode = #tpu.pipeline_mode<synchronous>, transform_indices = @transform_6, window_bounds = array<i64: 1, 256>}, {pipeline_mode = #tpu.pipeline_mode<synchronous>, transform_indices = @transform_7, window_bounds = array<i64: 256, 2>}, {pipeline_mode = #tpu.pipeline_mode<synchronous>, transform_indices = @transform_8, window_bounds = array<i64: 256, 2>}, {pipeline_mode = #tpu.pipeline_mode<synchronous>, transform_indices = @transform_9, window_bounds = array<i64: 1, 2>}, {transform_indices = @transform_10, window_bounds = array<i64: 8, 2>}]} {
    %c0 = arith.constant 0 : index
    %c0_0 = arith.constant 0 : index
    %0 = vector.load %arg1[%c0, %c0_0] : memref<8x20xbf16, #tpu.memory_space<vmem>>, vector<8x20xbf16>
    %c0_1 = arith.constant 0 : index
    %c0_2 = arith.constant 0 : index
    %1 = vector.load %arg2[%c0_1, %c0_2] : memref<20x512xbf16, #tpu.memory_space<vmem>>, vector<20x512xbf16>
    %cst = arith.constant dense<0.000000e+00> : vector<8x512xf32>
    %2 = tpu.matmul %0, %1, %cst {dimension_numbers = #tpu.dot_dimension_numbers<[1], [0], [0], [1], [0, 0, 1, 1], [], []>} : vector<8x20xbf16>, vector<20x512xbf16>, vector<8x512xf32> -> vector<8x512xf32>
    %c0_3 = arith.constant 0 : index
    %c0_4 = arith.constant 0 : index
    %3 = vector.load %arg3[%c0_3, %c0_4] : memref<1x512xf32, #tpu.memory_space<vmem>>, vector<1x512xf32>
    %4 = vector.broadcast %3 : vector<1x512xf32> to vector<8x512xf32>
    %5 = arith.addf %2, %4 : vector<8x512xf32>
    %cst_5 = arith.constant 0.000000e+00 : f32
    %6 = vector.broadcast %cst_5 : f32 to vector<8x512xf32>
    %7 = arith.maximumf %5, %6 : vector<8x512xf32>
    %8 = vector.extract_strided_slice %7 {offsets = [0, 0], sizes = [8, 256], strides = [1, 1]} : vector<8x512xf32> to vector<8x256xf32>
    %9 = arith.truncf %8 : vector<8x256xf32> to vector<8x256xbf16>
    %10 = vector.extract_strided_slice %7 {offsets = [0, 256], sizes = [8, 256], strides = [1, 1]} : vector<8x512xf32> to vector<8x256xf32>
    %11 = arith.truncf %10 : vector<8x256xf32> to vector<8x256xbf16>
    %c0_6 = arith.constant 0 : index
    %c0_7 = arith.constant 0 : index
    %12 = vector.load %arg4[%c0_6, %c0_7] : memref<256x256xbf16, #tpu.memory_space<vmem>>, vector<256x256xbf16>
    %cst_8 = arith.constant dense<0.000000e+00> : vector<8x256xf32>
    %13 = tpu.matmul %9, %12, %cst_8 {dimension_numbers = #tpu.dot_dimension_numbers<[1], [0], [0], [1], [0, 0, 1, 1], [], []>} : vector<8x256xbf16>, vector<256x256xbf16>, vector<8x256xf32> -> vector<8x256xf32>
    %c0_9 = arith.constant 0 : index
    %c0_10 = arith.constant 0 : index
    %14 = vector.load %arg5[%c0_9, %c0_10] : memref<1x256xf32, #tpu.memory_space<vmem>>, vector<1x256xf32>
    %15 = vector.broadcast %14 : vector<1x256xf32> to vector<8x256xf32>
    %16 = arith.addf %13, %15 : vector<8x256xf32>
    %cst_11 = arith.constant 0.000000e+00 : f32
    %17 = vector.broadcast %cst_11 : f32 to vector<8x256xf32>
    %18 = arith.maximumf %16, %17 : vector<8x256xf32>
    %c0_12 = arith.constant 0 : index
    %c0_13 = arith.constant 0 : index
    %19 = vector.load %arg6[%c0_12, %c0_13] : memref<256x256xbf16, #tpu.memory_space<vmem>>, vector<256x256xbf16>
    %cst_14 = arith.constant dense<0.000000e+00> : vector<8x256xf32>
    %20 = tpu.matmul %11, %19, %cst_14 {dimension_numbers = #tpu.dot_dimension_numbers<[1], [0], [0], [1], [0, 0, 1, 1], [], []>} : vector<8x256xbf16>, vector<256x256xbf16>, vector<8x256xf32> -> vector<8x256xf32>
    %c0_15 = arith.constant 0 : index
    %c0_16 = arith.constant 0 : index
    %21 = vector.load %arg7[%c0_15, %c0_16] : memref<1x256xf32, #tpu.memory_space<vmem>>, vector<1x256xf32>
    %22 = vector.broadcast %21 : vector<1x256xf32> to vector<8x256xf32>
    %23 = arith.addf %20, %22 : vector<8x256xf32>
    %cst_17 = arith.constant 0.000000e+00 : f32
    %24 = vector.broadcast %cst_17 : f32 to vector<8x256xf32>
    %25 = arith.maximumf %23, %24 : vector<8x256xf32>
    %26 = arith.truncf %18 : vector<8x256xf32> to vector<8x256xbf16>
    %c0_18 = arith.constant 0 : index
    %c0_19 = arith.constant 0 : index
    %27 = vector.load %arg8[%c0_18, %c0_19] : memref<256x2xbf16, #tpu.memory_space<vmem>>, vector<256x2xbf16>
    %cst_20 = arith.constant dense<0.000000e+00> : vector<8x2xf32>
    %28 = tpu.matmul %26, %27, %cst_20 {dimension_numbers = #tpu.dot_dimension_numbers<[1], [0], [0], [1], [0, 0, 1, 1], [], []>} : vector<8x256xbf16>, vector<256x2xbf16>, vector<8x2xf32> -> vector<8x2xf32>
    %29 = arith.truncf %25 : vector<8x256xf32> to vector<8x256xbf16>
    %c0_21 = arith.constant 0 : index
    %c0_22 = arith.constant 0 : index
    %30 = vector.load %arg9[%c0_21, %c0_22] : memref<256x2xbf16, #tpu.memory_space<vmem>>, vector<256x2xbf16>
    %cst_23 = arith.constant dense<0.000000e+00> : vector<8x2xf32>
    %31 = tpu.matmul %29, %30, %cst_23 {dimension_numbers = #tpu.dot_dimension_numbers<[1], [0], [0], [1], [0, 0, 1, 1], [], []>} : vector<8x256xbf16>, vector<256x2xbf16>, vector<8x2xf32> -> vector<8x2xf32>
    %32 = arith.addf %28, %31 : vector<8x2xf32>
    %c0_24 = arith.constant 0 : index
    %c0_25 = arith.constant 0 : index
    %33 = vector.load %arg10[%c0_24, %c0_25] : memref<1x2xf32, #tpu.memory_space<vmem>>, vector<1x2xf32>
    %34 = vector.broadcast %33 : vector<1x2xf32> to vector<8x2xf32>
    %35 = arith.addf %32, %34 : vector<8x2xf32>
    %c0_26 = arith.constant 0 : index
    %c0_27 = arith.constant 0 : index
    %36 = vector.load %arg11[%c0_26, %c0_27] : memref<8x2xf32, #tpu.memory_space<vmem>>, vector<8x2xf32>
    tpu.vector_store %arg11[%c0_26, %c0_27], %35 {strides = array<i32>} : memref<8x2xf32, #tpu.memory_space<vmem>>, vector<8x2xf32>,
    return
  }
  func.func @transform_0(%arg0: i32) -> (i32, i32) {
    %c0_i32 = arith.constant 0 : i32
    %c0_i32_0 = arith.constant 0 : i32
    return %arg0, %c0_i32 : i32, i32
  }
  func.func @transform_1(%arg0: i32) -> (i32, i32) {
    %c0_i32 = arith.constant 0 : i32
    %c0_i32_0 = arith.constant 0 : i32
    %c0_i32_1 = arith.constant 0 : i32
    return %c0_i32, %c0_i32_0 : i32, i32
  }
  func.func @transform_2(%arg0: i32) -> (i32, i32) {
    %c0_i32 = arith.constant 0 : i32
    %c0_i32_0 = arith.constant 0 : i32
    %c0_i32_1 = arith.constant 0 : i32
    return %c0_i32, %c0_i32_0 : i32, i32
  }
  func.func @transform_3(%arg0: i32) -> (i32, i32) {
    %c0_i32 = arith.constant 0 : i32
    %c0_i32_0 = arith.constant 0 : i32
    %c0_i32_1 = arith.constant 0 : i32
    return %c0_i32, %c0_i32_0 : i32, i32
  }
  func.func @transform_4(%arg0: i32) -> (i32, i32) {
    %c0_i32 = arith.constant 0 : i32
    %c0_i32_0 = arith.constant 0 : i32
    %c0_i32_1 = arith.constant 0 : i32
    return %c0_i32, %c0_i32_0 : i32, i32
  }
  func.func @transform_5(%arg0: i32) -> (i32, i32) {
    %c0_i32 = arith.constant 0 : i32
    %c0_i32_0 = arith.constant 0 : i32
    %c0_i32_1 = arith.constant 0 : i32
    return %c0_i32, %c0_i32_0 : i32, i32
  }
  func.func @transform_6(%arg0: i32) -> (i32, i32) {
    %c0_i32 = arith.constant 0 : i32
    %c0_i32_0 = arith.constant 0 : i32
    %c0_i32_1 = arith.constant 0 : i32
    return %c0_i32, %c0_i32_0 : i32, i32
  }
  func.func @transform_7(%arg0: i32) -> (i32, i32) {
    %c0_i32 = arith.constant 0 : i32
    %c0_i32_0 = arith.constant 0 : i32
    %c0_i32_1 = arith.constant 0 : i32
    return %c0_i32, %c0_i32_0 : i32, i32
  }
  func.func @transform_8(%arg0: i32) -> (i32, i32) {
    %c0_i32 = arith.constant 0 : i32
    %c0_i32_0 = arith.constant 0 : i32
    %c0_i32_1 = arith.constant 0 : i32
    return %c0_i32, %c0_i32_0 : i32, i32
  }
  func.func @transform_9(%arg0: i32) -> (i32, i32) {
    %c0_i32 = arith.constant 0 : i32
    %c0_i32_0 = arith.constant 0 : i32
    %c0_i32_1 = arith.constant 0 : i32
    return %c0_i32, %c0_i32_0 : i32, i32
  }
  func.func @transform_10(%arg0: i32) -> (i32, i32) {
    %c0_i32 = arith.constant 0 : i32
    %c0_i32_0 = arith.constant 0 : i32
    return %arg0, %c0_i32 : i32, i32
  }
}

</mosaic_0001>

<bundles_post_ra>
// kernel: critic_forward.1
= control target key start
LH: loop header
LB: loop body
LE: loop exit
PB: predicated region body
PF: predicated region fallthrough
CT: control target
= control target key end

     0   :  { %15 = vsyncpa [#allocation3], 0  ;;  %s1384_s13 = smov [#allocation2]   ;;  %s1697_s0 = inlined_call_operand.vmem [shape: bf16[8,20], index: 0, kind: input, shape index: {}]   ;;  %s1698_s1 = inlined_call_operand.vmem [shape: bf16[20,512], index: 1, kind: input, shape index: {}]   ;;  %s1699_s2 = inlined_call_operand.vmem [shape: f32[1,512], index: 2, kind: input, shape index: {}]   ;;  %s1700_s3 = inlined_call_operand.vmem [shape: bf16[256,256], index: 3, kind: input, shape index: {}]   ;;  %s1701_s4 = inlined_call_operand.vmem [shape: f32[1,256], index: 4, kind: input, shape index: {}]   ;;  %s1702_s5 = inlined_call_operand.hbm [shape: bf16[256,256], index: 5, kind: input, shape index: {}]   ;;  %s1703_s6 = inlined_call_operand.vmem [shape: f32[1,256], index: 6, kind: input, shape index: {}]   ;;  %s1704_s7 = inlined_call_operand.vmem [shape: bf16[256,2], index: 7, kind: input, shape index: {}]   ;;  %s1705_s8 = inlined_call_operand.vmem [shape: bf16[256,2], index: 8, kind: input, shape index: {}]   ;;  %s1706_s9 = inlined_call_operand.vmem [shape: f32[1,2], index: 9, kind: input, shape index: {}]   ;;  %s1707_s10 = inlined_call_operand.vmem [shape: f32[8,2], index: 10, kind: output, shape index: {}]  }
   0x1   :  { %s31_s14 = sshll.u32 %s1384_s13, 4  ;;  %s1360_s17 = scalar_lea.hbm %s1702_s5, 4096  ;;  %s32_s14 = int_to_ptr.vmem [resolvable:$true] %s31_s14 }
   0x2   :  { %p1361_p0 = scmp.ne.s32.totalorder %s1702_s5, %s1360_s17  ;;  %p1364_p1 = scmp.lt.u32.totalorder %s1360_s17, %s1702_s5 }
   0x4   :  { %p1366_p2 = pnand %p1364_p1, %p1361_p0 }
   0x6   :  { %1369 = shalt.err (!%p1366_p2)
}
   0x7   :  { %s1370_s22 = scalar_lea.vmem %s32_s14, 4096  ;;  %p1375_p4 = scmp.lt.s32.totalorder %s32_s14, %s32_s14 }
   0x8   :  { %p1371_p3 = scmp.ne.s32.totalorder %s32_s14, %s1370_s22  ;;  %p1376_p5 = scmp.lt.s32.totalorder %s1370_s22, %s1370_s22 }
   0xa   :  { %p1377_p6 = por %p1376_p5, %p1375_p4 }
   0xc   :  { %p1378_p7 = pnand %p1377_p6, %p1371_p3 }
   0xe   :  { %1381 = shalt.err (!%p1378_p7)
}
   0xf   :  { %s1385_s23 = smov 128   ;;  %s1386_s24 = smov 8  }
  0x10   :  { %37 = dma.hbm_to_vmem [thread:$0]  %s1702_s5, 4096, %s32_s14, [#allocation3], %s1385_s23, %s1385_s23, %s1386_s24  }
  0x11   :  { %1382 = dma.done.wait [#allocation3], 4096  }
  0x12   :  { %1383 = vsyncadd [#allocation3], 4294963200  ;;  %v1387_v0 = vmov 0   ;;  %v1222_v1 = vld [vmem:[%s1698_s1 + $0x4] ss:$16 sps:$4 sm:$0xff]   ;;  %vm113_vm0 = vcmask 1041408  }
  0x13   :  { %158 = vmatprep.mubr.bf16.mxu0 %v1387_v0  ;;  %199 = vmatprep.mubr.bf16.mxu1 %v1387_v0  ;;  %v1224_v2 = vld [vmem:[%s1698_s1 + $0xc] ss:$16 sps:$4 sm:$0xff]   ;;  %v1226_v3 = vld [vmem:[%s1698_s1] ss:$16 sps:$4 sm:$0xff]   ;;  %v1227_v4 = vld [vmem:[%s1698_s1 + $0x8] ss:$16 sps:$4 sm:$0xff]  }
  0x14   :  { %126 = vmatprep.subr.bf16.mxu0 %v1222_v1  ;;  %v55_v5 = vld [vmem:[%s1698_s1 + $0x20] sm:$0x33]  ;;  %167 = vmatprep.subr.bf16.mxu1 %v1224_v2  ;;  %v56_v7 = vld [vmem:[%s1698_s1 + $0x28] sm:$0x33]  ;;  %vm109_vm1 = vcmask 162816   ;;  %vm1058_vm2 = vcmask 15360  }
  0x15   :  { %v1070_v6 = vcombine.high %v55_v5, %v55_v5  ;;  %v1069_v8 = vcombine.low %v55_v5, %v55_v5  ;;  %127 = vmatpush1.bf16.msra.mxu0 %v1226_v3  ;;  %168 = vmatpush1.bf16.msra.mxu1 %v1227_v4  ;;  %v1072_v9 = vcombine.high %v56_v7, %v56_v7  ;;  %v1234_v12 = vld [vmem:[%s1700_s3 + $0x4] ss:$8 sps:$4 sm:$0xff]   ;;  %v50_v15 = vld [vmem:[%s1697_s0] sm:$0xf]  ;;  %v1240_v18 = vld [vmem:[%s1700_s3 + $0x14] ss:$8 sps:$4 sm:$0xff]  }
  0x16   :  { %v1071_v10 = vcombine.low %v56_v7, %v56_v7  ;;  %v1237_v14 = vld [vmem:[#allocation2 + $0x4] ss:$8 sps:$4 sm:$0xff]   ;;  %v1232_v16 = vld [vmem:[%s1700_s3] ss:$8 sps:$4 sm:$0xff]   ;;  %v1243_v19 = vld [vmem:[#allocation2 + $0x14] ss:$8 sps:$4 sm:$0xff]  }
  0x17   :  { %1073 = vmatprep.subr.msk.bf16.mxu0 %vm113_vm0, %v1070_v6  ;;  %v115_v11 = vsel %vm113_vm0, %v1069_v8, 0  ;;  %1075 = vmatprep.subr.msk.bf16.mxu1 %vm113_vm0, %v1072_v9  ;;  %v1235_v17 = vld [vmem:[#allocation2] ss:$8 sps:$4 sm:$0xff]   ;;  %v1238_v20 = vld [vmem:[%s1700_s3 + $0x10] ss:$8 sps:$4 sm:$0xff]  }
  0x18   :  { %v121_v13 = vsel %vm113_vm0, %v1071_v10, 0  ;;  %v1241_v21 = vld [vmem:[#allocation2 + $0x10] ss:$8 sps:$4 sm:$0xff]   ;;  %v1246_v22 = vld [vmem:[%s1700_s3 + $0x24] ss:$8 sps:$4 sm:$0xff]  }
  0x19   :  { %129 = vmatpush1.bf16.msra.mxu0 %v115_v11  ;;  %170 = vmatpush1.bf16.msra.mxu1 %v121_v13  ;;  %v1249_v23 = vld [vmem:[#allocation2 + $0x24] ss:$8 sps:$4 sm:$0xff]   ;;  %v1244_v24 = vld [vmem:[%s1700_s3 + $0x20] ss:$8 sps:$4 sm:$0xff]   ;;  %v1252_v26 = vld [vmem:[%s1700_s3 + $0x34] ss:$8 sps:$4 sm:$0xff]  }
  0x1a   :  { %420 = vmatprep.subr.bf16.mxu0 %v1234_v12  ;;  %667 = vmatprep.subr.bf16.mxu1 %v1237_v14  ;;  %v1247_v25 = vld [vmem:[#allocation2 + $0x20] ss:$8 sps:$4 sm:$0xff]   ;;  %v1255_v27 = vld [vmem:[#allocation2 + $0x34] ss:$8 sps:$4 sm:$0xff]   ;;  %v1250_v28 = vld [vmem:[%s1700_s3 + $0x30] ss:$8 sps:$4 sm:$0xff]  }
  0x1b   :  { %v1253_v29 = vld [vmem:[#allocation2 + $0x30] ss:$8 sps:$4 sm:$0xff]   ;;  %v1258_v30 = vld [vmem:[%s1700_s3 + $0x44] ss:$8 sps:$4 sm:$0xff]   ;;  %v1256_v32 = vld [vmem:[%s1700_s3 + $0x40] ss:$8 sps:$4 sm:$0xff]  }
  0x1c   :  { %1074 = vmatmul.mubr.msk.bf16.vlgmr.msra.gmra.mrb[0].mxu0 %vm109_vm1, %v50_v15  ;;  %1076 = vmatmul.mubr.msk.bf16.vlgmr.msra.gmra.mrb[0].mxu1 %vm109_vm1, %v50_v15  ;;  %v1261_v31 = vld [vmem:[#allocation2 + $0x44] ss:$8 sps:$4 sm:$0xff]   ;;  %v1259_v33 = vld [vmem:[#allocation2 + $0x40] ss:$8 sps:$4 sm:$0xff]   ;;  %v1264_v34 = vld [vmem:[%s1700_s3 + $0x54] ss:$8 sps:$4 sm:$0xff]  }
  0x1d   :  { %421 = vmatpush1.bf16.msra.mxu0 %v1232_v16  ;;  %668 = vmatpush1.bf16.msra.mxu1 %v1235_v17  ;;  %v1267_v35 = vld [vmem:[#allocation2 + $0x54] ss:$8 sps:$4 sm:$0xff]   ;;  %v1262_v36 = vld [vmem:[%s1700_s3 + $0x50] ss:$8 sps:$4 sm:$0xff]   ;;  %v1270_v38 = vld [vmem:[%s1700_s3 + $0x64] ss:$8 sps:$4 sm:$0xff]   ;;  %v59_v16 = vlaneseq }
  0x1e   :  { %422 = vmatprep.subr.bf16.mxu0 %v1240_v18  ;;  %669 = vmatprep.subr.bf16.mxu1 %v1243_v19  ;;  %v1265_v37 = vld [vmem:[#allocation2 + $0x50] ss:$8 sps:$4 sm:$0xff]   ;;  %v1273_v39 = vld [vmem:[#allocation2 + $0x64] ss:$8 sps:$4 sm:$0xff]   ;;  %v1268_v40 = vld [vmem:[%s1700_s3 + $0x60] ss:$8 sps:$4 sm:$0xff]  }
  0x1f   :  { %v1271_v41 = vld [vmem:[#allocation2 + $0x60] ss:$8 sps:$4 sm:$0xff]   ;;  %v1276_v42 = vld [vmem:[%s1700_s3 + $0x74] ss:$8 sps:$4 sm:$0xff]   ;;  %v1274_v44 = vld [vmem:[%s1700_s3 + $0x70] ss:$8 sps:$4 sm:$0xff]  }
  0x20   :  { %v1279_v43 = vld [vmem:[#allocation2 + $0x74] ss:$8 sps:$4 sm:$0xff]   ;;  %v1277_v45 = vld [vmem:[#allocation2 + $0x70] ss:$8 sps:$4 sm:$0xff]   ;;  %v1282_v46 = vld [vmem:[%s1700_s3 + $0x84] ss:$8 sps:$4 sm:$0xff]  }
  0x21   :  { %423 = vmatpush1.bf16.msra.mxu0 %v1238_v20  ;;  %670 = vmatpush1.bf16.msra.mxu1 %v1241_v21  ;;  %v1285_v47 = vld [vmem:[#allocation2 + $0x84] ss:$8 sps:$4 sm:$0xff]   ;;  %v1280_v48 = vld [vmem:[%s1700_s3 + $0x80] ss:$8 sps:$4 sm:$0xff]   ;;  %v1288_v50 = vld [vmem:[%s1700_s3 + $0x94] ss:$8 sps:$4 sm:$0xff]  }
  0x22   :  { %424 = vmatprep.subr.bf16.mxu0 %v1246_v22  ;;  %671 = vmatprep.subr.bf16.mxu1 %v1249_v23  ;;  %v1283_v49 = vld [vmem:[#allocation2 + $0x80] ss:$8 sps:$4 sm:$0xff]   ;;  %v1291_v51 = vld [vmem:[#allocation2 + $0x94] ss:$8 sps:$4 sm:$0xff]   ;;  %v1286_v52 = vld [vmem:[%s1700_s3 + $0x90] ss:$8 sps:$4 sm:$0xff]  }
  0x23   :  { %v1289_v53 = vld [vmem:[#allocation2 + $0x90] ss:$8 sps:$4 sm:$0xff]   ;;  %v1294_v54 = vld [vmem:[%s1700_s3 + $0xa4] ss:$8 sps:$4 sm:$0xff]   ;;  %v1292_v56 = vld [vmem:[%s1700_s3 + $0xa0] ss:$8 sps:$4 sm:$0xff]  }
  0x24   :  { %v1297_v55 = vld [vmem:[#allocation2 + $0xa4] ss:$8 sps:$4 sm:$0xff]   ;;  %v1295_v57 = vld [vmem:[#allocation2 + $0xa0] ss:$8 sps:$4 sm:$0xff]   ;;  %v1300_v58 = vld [vmem:[%s1700_s3 + $0xb4] ss:$8 sps:$4 sm:$0xff]  }
  0x25   :  { %425 = vmatpush1.bf16.msra.mxu0 %v1244_v24  ;;  %672 = vmatpush1.bf16.msra.mxu1 %v1247_v25  ;;  %v1303_v59 = vld [vmem:[#allocation2 + $0xb4] ss:$8 sps:$4 sm:$0xff]   ;;  %v1298_v60 = vld [vmem:[%s1700_s3 + $0xb0] ss:$8 sps:$4 sm:$0xff]   ;;  %v1306_v62 = vld [vmem:[%s1700_s3 + $0xc4] ss:$8 sps:$4 sm:$0xff]  }
  0x26   :  { %426 = vmatprep.subr.bf16.mxu0 %v1252_v26  ;;  %673 = vmatprep.subr.bf16.mxu1 %v1255_v27  ;;  %v1301_v61 = vld [vmem:[#allocation2 + $0xb0] ss:$8 sps:$4 sm:$0xff]   ;;  %v1309_v63 = vld [vmem:[#allocation2 + $0xc4] ss:$8 sps:$4 sm:$0xff]   ;;  %v1304_v0 = vld [vmem:[%s1700_s3 + $0xc0] ss:$8 sps:$4 sm:$0xff]  }
  0x27   :  { %v1307_v1 = vld [vmem:[#allocation2 + $0xc0] ss:$8 sps:$4 sm:$0xff]   ;;  %v1312_v2 = vld [vmem:[%s1700_s3 + $0xd4] ss:$8 sps:$4 sm:$0xff]   ;;  %v1310_v4 = vld [vmem:[%s1700_s3 + $0xd0] ss:$8 sps:$4 sm:$0xff]  }
  0x28   :  { %v1315_v3 = vld [vmem:[#allocation2 + $0xd4] ss:$8 sps:$4 sm:$0xff]   ;;  %v1313_v5 = vld [vmem:[#allocation2 + $0xd0] ss:$8 sps:$4 sm:$0xff]   ;;  %v1318_v6 = vld [vmem:[%s1700_s3 + $0xe4] ss:$8 sps:$4 sm:$0xff]  }
  0x29   :  { %427 = vmatpush1.bf16.msra.mxu0 %v1250_v28  ;;  %674 = vmatpush1.bf16.msra.mxu1 %v1253_v29  ;;  %v1321_v7 = vld [vmem:[#allocation2 + $0xe4] ss:$8 sps:$4 sm:$0xff]   ;;  %v1316_v8 = vld [vmem:[%s1700_s3 + $0xe0] ss:$8 sps:$4 sm:$0xff]   ;;  %v1324_v10 = vld [vmem:[%s1700_s3 + $0xf4] ss:$8 sps:$4 sm:$0xff]  }
  0x2a   :  { %428 = vmatprep.subr.bf16.mxu0 %v1258_v30  ;;  %675 = vmatprep.subr.bf16.mxu1 %v1261_v31  ;;  %v1319_v9 = vld [vmem:[#allocation2 + $0xe0] ss:$8 sps:$4 sm:$0xff]   ;;  %v1327_v11 = vld [vmem:[#allocation2 + $0xf4] ss:$8 sps:$4 sm:$0xff]   ;;  %v1322_v12 = vld [vmem:[%s1700_s3 + $0xf0] ss:$8 sps:$4 sm:$0xff]  }
  0x2b   :  { %v1325_v13 = vld [vmem:[#allocation2 + $0xf0] ss:$8 sps:$4 sm:$0xff]   ;;  %v1328_v14 = vld [vmem:[%s1705_s8 + $0x40] sm:$0xff]   ;;  %v60_v17 = vshrl.u32 %v59_v16, 7 }
  0x2c   :  { %v1329_v15 = vld [vmem:[%s1704_s7 + $0x40] sm:$0xff]  }
  0x2d   :  { %429 = vmatpush1.bf16.msra.mxu0 %v1256_v32  ;;  %676 = vmatpush1.bf16.msra.mxu1 %v1259_v33  ;;  %v1582_v18 = vsub.s32 0, %v60_v17  ;;  %v69_v19 = vsub.s32 2, %v60_v17  ;;  %v57_v20 = vld [vmem:[%s1699_s2] sm:$0xf]  ;;  %v1587_v21 = vsub.s32 1, %v60_v17  ;;  %v73_v22 = vsub.s32 3, %v60_v17 }
  0x2e   :  { %430 = vmatprep.subr.bf16.mxu0 %v1264_v34  ;;  %677 = vmatprep.subr.bf16.mxu1 %v1267_v35 }
  0x2f   :  { %v62_v23 = vrot.slane %v57_v20, %v1582_v18  ;;  %v70_v24 = vrot.slane %v57_v20, %v69_v19  ;;  %v66_v25 = vrot.slane %v57_v20, %v1587_v21  ;;  %v74_v26 = vrot.slane %v57_v20, %v73_v22 }
  0x31   :  { %431 = vmatpush1.bf16.msra.mxu0 %v1262_v36  ;;  %678 = vmatpush1.bf16.msra.mxu1 %v1265_v37 }
  0x32   :  { %432 = vmatprep.subr.bf16.mxu0 %v1270_v38  ;;  %679 = vmatprep.subr.bf16.mxu1 %v1273_v39 }
  0x35   :  { %433 = vmatpush1.bf16.msra.mxu0 %v1268_v40  ;;  %680 = vmatpush1.bf16.msra.mxu1 %v1271_v41 }
  0x36   :  { %434 = vmatprep.subr.bf16.mxu0 %v1276_v42  ;;  %681 = vmatprep.subr.bf16.mxu1 %v1279_v43 }
  0x39   :  { %435 = vmatpush1.bf16.msra.mxu0 %v1274_v44  ;;  %682 = vmatpush1.bf16.msra.mxu1 %v1277_v45  ;;  %v1330_v45 = vld [vmem:[%s1705_s8] sm:$0xff]  }
  0x3a   :  { %436 = vmatprep.subr.bf16.mxu0 %v1282_v46  ;;  %683 = vmatprep.subr.bf16.mxu1 %v1285_v47  ;;  %v1331_v46 = vld [vmem:[%s1704_s7] sm:$0xff]  }
  0x3d   :  { %437 = vmatpush1.bf16.msra.mxu0 %v1280_v48  ;;  %684 = vmatpush1.bf16.msra.mxu1 %v1283_v49  ;;  %v1332_v49 = vld [vmem:[%s1705_s8 + $0x48] sm:$0xff]  }
  0x3e   :  { %438 = vmatprep.subr.bf16.mxu0 %v1288_v50  ;;  %685 = vmatprep.subr.bf16.mxu1 %v1291_v51  ;;  %v1333_v50 = vld [vmem:[%s1704_s7 + $0x48] sm:$0xff]  }
  0x3f   :  { %v1334_v51 = vld [vmem:[%s1705_s8 + $0x8] sm:$0xff]  }
  0x41   :  { %439 = vmatpush1.bf16.msra.mxu0 %v1286_v52  ;;  %686 = vmatpush1.bf16.msra.mxu1 %v1289_v53  ;;  %v1335_v52 = vld [vmem:[%s1704_s7 + $0x8] sm:$0xff]   ;;  %v1336_v53 = vld [vmem:[%s1705_s8 + $0x50] sm:$0xff]  }
  0x42   :  { %440 = vmatprep.subr.bf16.mxu0 %v1294_v54  ;;  %687 = vmatprep.subr.bf16.mxu1 %v1297_v55  ;;  %v1337_v54 = vld [vmem:[%s1704_s7 + $0x50] sm:$0xff]  }
  0x43   :  { %v1338_v55 = vld [vmem:[%s1705_s8 + $0x10] sm:$0xff]  }
  0x45   :  { %441 = vmatpush1.bf16.msra.mxu0 %v1292_v56  ;;  %688 = vmatpush1.bf16.msra.mxu1 %v1295_v57  ;;  %v1339_v56 = vld [vmem:[%s1704_s7 + $0x10] sm:$0xff]   ;;  %v1340_v57 = vld [vmem:[%s1705_s8 + $0x58] sm:$0xff]  }
  0x46   :  { %442 = vmatprep.subr.bf16.mxu0 %v1300_v58  ;;  %689 = vmatprep.subr.bf16.mxu1 %v1303_v59  ;;  %v1341_v58 = vld [vmem:[%s1704_s7 + $0x58] sm:$0xff]  }
  0x47   :  { %v1342_v59 = vld [vmem:[%s1705_s8 + $0x18] sm:$0xff]  }
  0x49   :  { %443 = vmatpush1.bf16.msra.mxu0 %v1298_v60  ;;  %690 = vmatpush1.bf16.msra.mxu1 %v1301_v61  ;;  %v1343_v60 = vld [vmem:[%s1704_s7 + $0x18] sm:$0xff]   ;;  %v1344_v61 = vld [vmem:[%s1705_s8 + $0x60] sm:$0xff]  }
  0x4a   :  { %444 = vmatprep.subr.bf16.mxu0 %v1306_v62  ;;  %691 = vmatprep.subr.bf16.mxu1 %v1309_v63  ;;  %v1345_v62 = vld [vmem:[%s1704_s7 + $0x60] sm:$0xff]  }
  0x4b   :  { %v1346_v63 = vld [vmem:[%s1705_s8 + $0x20] sm:$0xff]  }
  0x4d   :  { %445 = vmatpush1.bf16.msra.mxu0 %v1304_v0  ;;  %692 = vmatpush1.bf16.msra.mxu1 %v1307_v1  ;;  %v1347_v0 = vld [vmem:[%s1704_s7 + $0x20] sm:$0xff]   ;;  %v1348_v1 = vld [vmem:[%s1705_s8 + $0x68] sm:$0xff]  }
  0x4e   :  { %446 = vmatprep.subr.bf16.mxu0 %v1312_v2  ;;  %693 = vmatprep.subr.bf16.mxu1 %v1315_v3  ;;  %v1349_v2 = vld [vmem:[%s1704_s7 + $0x68] sm:$0xff]  }
  0x4f   :  { %v1350_v3 = vld [vmem:[%s1705_s8 + $0x28] sm:$0xff]  }
  0x51   :  { %447 = vmatpush1.bf16.msra.mxu0 %v1310_v4  ;;  %694 = vmatpush1.bf16.msra.mxu1 %v1313_v5  ;;  %v1351_v4 = vld [vmem:[%s1704_s7 + $0x28] sm:$0xff]   ;;  %v1352_v5 = vld [vmem:[%s1705_s8 + $0x70] sm:$0xff]  }
  0x52   :  { %448 = vmatprep.subr.bf16.mxu0 %v1318_v6  ;;  %695 = vmatprep.subr.bf16.mxu1 %v1321_v7  ;;  %v1353_v6 = vld [vmem:[%s1704_s7 + $0x70] sm:$0xff]  }
  0x53   :  { %v1354_v7 = vld [vmem:[%s1705_s8 + $0x30] sm:$0xff]  }
  0x55   :  { %449 = vmatpush1.bf16.msra.mxu0 %v1316_v8  ;;  %696 = vmatpush1.bf16.msra.mxu1 %v1319_v9  ;;  %v1355_v8 = vld [vmem:[%s1704_s7 + $0x30] sm:$0xff]   ;;  %v1356_v9 = vld [vmem:[%s1705_s8 + $0x78] sm:$0xff]  }
  0x56   :  { %450 = vmatprep.subr.bf16.mxu0 %v1324_v10  ;;  %697 = vmatprep.subr.bf16.mxu1 %v1327_v11  ;;  %v1357_v10 = vld [vmem:[%s1704_s7 + $0x78] sm:$0xff]  }
  0x57   :  { %v1358_v11 = vld [vmem:[%s1705_s8 + $0x38] sm:$0xff]  }
  0x59   :  { %451 = vmatpush1.bf16.msra.mxu0 %v1322_v12  ;;  %698 = vmatpush1.bf16.msra.mxu1 %v1325_v13  ;;  %v1359_v12 = vld [vmem:[%s1704_s7 + $0x38] sm:$0xff]   ;;  %v248_v13 = vld [vmem:[%s1701_s4] sm:$0x3] }
  0x5a   :  { %1174 = vmatprep.subr.bf16.mxu0 %v1328_v14  ;;  %1196 = vmatprep.subr.bf16.mxu1 %v1329_v15  ;;  %v495_v14 = vld [vmem:[%s1703_s6] sm:$0x3]  ;;  %v253_v15 = vrot.slane %v248_v13, %v1582_v18  ;;  %v257_v17 = vrot.slane %v248_v13, %v1587_v21 }
  0x5b   :  { %v500_v16 = vrot.slane %v495_v14, %v1582_v18  ;;  %v504_v19 = vrot.slane %v495_v14, %v1587_v21 }
  0xef   :  { %v160_v27 = vpop.f32.mrb[0].mxu0  ;;  %v201_v28 = vpop.f32.mrb[0].mxu1 }
  0xf0   :  { %v161_v29 = vadd.f32 %v160_v27, %v62_v23  ;;  %v202_v30 = vadd.f32 %v201_v28, %v70_v24  ;;  %v162_v31 = vpop.f32.mrb[1].mxu0  ;;  %v203_v32 = vpop.f32.mrb[1].mxu1 }
  0xf1   :  { %v163_v33 = vadd.f32 %v162_v31, %v66_v25  ;;  %v204_v34 = vadd.f32 %v203_v32, %v74_v26  ;;  %v164_v35 = vpop.f32.mrb[2].mxu0  ;;  %v205_v36 = vpop.f32.mrb[2].mxu1 }
  0xf2   :  { %v208_v37 = vmax.f32 %v161_v29, 0.0  ;;  %v210_v38 = vmax.f32 %v202_v30, 0.0  ;;  %v165_v39 = vpop.f32.mrb[3].mxu0  ;;  %v206_v40 = vpop.f32.mrb[3].mxu1 }
  0xf3   :  { %v209_v41 = vmax.f32 %v163_v33, 0.0  ;;  %v211_v42 = vmax.f32 %v204_v34, 0.0 }
  0xf4   :  { %v212_v47 = vpack.c.bf16 %v208_v37, %v208_v37  ;;  %v214_v48 = vpack.c.bf16 %v210_v38, %v210_v38 }
  0xf5   :  { %v213_v43 = vpack.c.bf16 %v209_v41, %v209_v41  ;;  %v215_v44 = vpack.c.bf16 %v211_v42, %v211_v42 }
  0xf7   :  { %452 = vmatprep.mubr.bf16.mxu0 %v213_v43  ;;  %699 = vmatprep.mubr.bf16.mxu1 %v215_v44 }
  0xf8   :  { %453 = vmatmul.mubr.bf16.vlgmr.msra.gmra.mrb[4].mxu0 %v212_v47  ;;  %700 = vmatmul.mubr.bf16.vlgmr.msra.gmra.mrb[4].mxu1 %v214_v48  ;;  %v1173_v47 = vld [vmem:[%s1706_s9] ss:$0 sm:$0xff] }
  0xf9   :  { %1175 = vmatpush3.bf16.msra.mxu0 %v1330_v45  ;;  %1197 = vmatpush3.bf16.msra.mxu1 %v1331_v46 }
  0xfa   :  { %1176 = vmatprep.subr.bf16.mxu0 %v1332_v49  ;;  %1198 = vmatprep.subr.bf16.mxu1 %v1333_v50 }
  0xfd   :  { %1177 = vmatpush3.bf16.msra.mxu0 %v1334_v51  ;;  %1199 = vmatpush3.bf16.msra.mxu1 %v1335_v52 }
  0xfe   :  { %1178 = vmatprep.subr.bf16.mxu0 %v1336_v53  ;;  %1200 = vmatprep.subr.bf16.mxu1 %v1337_v54 }
 0x101   :  { %1179 = vmatpush3.bf16.msra.mxu0 %v1338_v55  ;;  %1201 = vmatpush3.bf16.msra.mxu1 %v1339_v56 }
 0x102   :  { %1180 = vmatprep.subr.bf16.mxu0 %v1340_v57  ;;  %1202 = vmatprep.subr.bf16.mxu1 %v1341_v58 }
 0x105   :  { %1181 = vmatpush3.bf16.msra.mxu0 %v1342_v59  ;;  %1203 = vmatpush3.bf16.msra.mxu1 %v1343_v60 }
 0x106   :  { %1182 = vmatprep.subr.bf16.mxu0 %v1344_v61  ;;  %1204 = vmatprep.subr.bf16.mxu1 %v1345_v62 }
 0x109   :  { %1183 = vmatpush3.bf16.msra.mxu0 %v1346_v63  ;;  %1205 = vmatpush3.bf16.msra.mxu1 %v1347_v0 }
 0x10a   :  { %1184 = vmatprep.subr.bf16.mxu0 %v1348_v1  ;;  %1206 = vmatprep.subr.bf16.mxu1 %v1349_v2 }
 0x10d   :  { %1185 = vmatpush3.bf16.msra.mxu0 %v1350_v3  ;;  %1207 = vmatpush3.bf16.msra.mxu1 %v1351_v4 }
 0x10e   :  { %1186 = vmatprep.subr.bf16.mxu0 %v1352_v5  ;;  %1208 = vmatprep.subr.bf16.mxu1 %v1353_v6 }
 0x111   :  { %1187 = vmatpush3.bf16.msra.mxu0 %v1354_v7  ;;  %1209 = vmatpush3.bf16.msra.mxu1 %v1355_v8 }
 0x112   :  { %1188 = vmatprep.subr.bf16.mxu0 %v1356_v9  ;;  %1210 = vmatprep.subr.bf16.mxu1 %v1357_v10 }
 0x115   :  { %1189 = vmatpush3.bf16.msra.mxu0 %v1358_v11  ;;  %1211 = vmatpush3.bf16.msra.mxu1 %v1359_v12 }
 0x1cb   :  { %v454_v20 = vpop.f32.mrb[4].mxu0  ;;  %v701_v22 = vpop.f32.mrb[4].mxu1 }
 0x1cc   :  { %v455_v23 = vadd.f32 %v454_v20, %v253_v15  ;;  %v702_v24 = vadd.f32 %v701_v22, %v500_v16  ;;  %v456_v25 = vpop.f32.mrb[5].mxu0  ;;  %v703_v26 = vpop.f32.mrb[5].mxu1 }
 0x1cd   :  { %v457_v27 = vadd.f32 %v456_v25, %v257_v17  ;;  %v704_v28 = vadd.f32 %v703_v26, %v504_v19  ;;  %v458_v29 = vpop.f32.mrb[6].mxu0  ;;  %v705_v30 = vpop.f32.mrb[6].mxu1 }
 0x1ce   :  { %v461_v31 = vmax.f32 %v455_v23, 0.0  ;;  %v708_v32 = vmax.f32 %v702_v24, 0.0  ;;  %v459_v33 = vpop.f32.mrb[7].mxu0  ;;  %v706_v34 = vpop.f32.mrb[7].mxu1 }
 0x1cf   :  { %v462_v35 = vmax.f32 %v457_v27, 0.0  ;;  %v709_v18 = vmax.f32 %v704_v28, 0.0 }
 0x1d0   :  { %v710_v38 = vpack.c.bf16 %v461_v31, %v461_v31  ;;  %v744_v21 = vpack.c.bf16 %v708_v32, %v708_v32 }
 0x1d1   :  { %v711_v36 = vpack.c.bf16 %v462_v35, %v462_v35  ;;  %v745_v37 = vpack.c.bf16 %v709_v18, %v709_v18 }
 0x1d3   :  { %906 = vmatprep.mubr.bf16.mxu0 %v745_v37  ;;  %1042 = vmatprep.mubr.bf16.mxu1 %v711_v36 }
 0x1d4   :  { %907 = vmatmul.mubr.bf16.vlgmr.msra.gmra.mrb[8].mxu0 %v744_v21  ;;  %1043 = vmatmul.mubr.bf16.vlgmr.msra.gmra.mrb[8].mxu1 %v710_v38 }
 0x2a7   :  { %v1190_v39 = vpop.f32.mrb[8].mxu0  ;;  %v1212_v40 = vpop.f32.mrb[8].mxu1 }
 0x2a8   :  { %v1191_v41 = vpop.f32.mrb[9].mxu0  ;;  %v1213_v42 = vpop.f32.mrb[9].mxu1 }
 0x2a9   :  { %v1192_v43 = vadd.f32 %v1191_v41, %v1190_v39  ;;  %v1214_v44 = vadd.f32 %v1213_v42, %v1212_v40  ;;  %v1193_v45 = vpop.f32.mrb[10].mxu0  ;;  %v1215_v46 = vpop.f32.mrb[10].mxu1 }
 0x2aa   :  { %v1194_v48 = vpop.f32.mrb[11].mxu0  ;;  %v1216_v49 = vpop.f32.mrb[11].mxu1 }
 0x2ab   :  { %v1045_v50 = vadd.f32 %v1214_v44, %v1192_v43 }
 0x2ad   :  { %v1057_v51 = vadd.f32 %v1173_v47, %v1045_v50 }
 0x2af   :  { %1059 = vst.msk [vmem:[%s1707_s10] sm:$0xff] %vm1058_vm2, %v1057_v51 }
 0x2b0   :  { %1064 = vsyncpa [#allocation3], 1 }

</bundles_post_ra>
